<compile_context>
chip_gen: v5e
topology: v5e:2x2
jax: 0.10.0
libtpu: 0.0.40
codegen_flags: <defaults>
</compile_context>

<pallas_src>
import functools

import jax
import jax.numpy as jnp
from jax.experimental import pallas as pl
from jax.experimental.pallas import tpu as pltpu


def _round_up(x, m):
    return (x + m - 1) // m * m


def _focal_loss_kernel(x_ref, t_ref, f_ref, e_ref, acc_ref, *,
                       gamma, b_total, tb, valid_rows_last):
    b = pl.program_id(1)
    nb = pl.num_programs(1)

    @pl.when(b == 0)
    def _init():
        acc_ref[...] = jnp.zeros_like(acc_ref)

    # Cast to f32 on the VPU; DMA traffic stays at the native input width.
    x = x_ref[...].astype(jnp.float32)
    t = t_ref[...].astype(jnp.float32)

    # Numerically stable BCE with logits, reduction='none'.
    expanded = jnp.maximum(x, 0.0) - x * t + jnp.log1p(jnp.exp(-jnp.abs(x)))
    e_ref[...] = expanded.astype(e_ref.dtype)   # OOB rows/cols of partial blocks are dropped

    def _sublane_partial_sum(v):
        # (TB, TC) -> (TB//8, 8, TC) -> sum axis 0 -> (8, TC):
        # pure vreg-wise VALU adds; the 8->1 cross-sublane (XLU) reduce is
        # deferred to the finalize step.
        return v.reshape(tb // 8, 8, v.shape[-1]).sum(axis=0)

    if valid_rows_last is None:
        # B is a multiple of TB: no out-of-bounds rows anywhere.
        acc_ref[...] += _sublane_partial_sum(expanded)
    else:
        # Only the LAST B tile contains out-of-bounds (garbage) rows.
        @pl.when(b != nb - 1)
        def _acc_full():
            acc_ref[...] += _sublane_partial_sum(expanded)

        @pl.when(b == nb - 1)
        def _acc_masked():
            row = jax.lax.broadcasted_iota(jnp.int32, expanded.shape, 0)
            masked = jnp.where(row < valid_rows_last, expanded, 0.0)
            acc_ref[...] += _sublane_partial_sum(masked)

    @pl.when(b == nb - 1)
    def _finalize():
        # Single sublane reduce, then mean over the TRUE batch size.
        loss = acc_ref[...].sum(axis=0, keepdims=True) * (1.0 / b_total)
        pt = jnp.exp(-loss)
        one_m_pt = 1.0 - pt
        g = float(gamma)
        if g == int(g) and g >= 0.0:
            # Integer gamma: repeated multiply, avoids exp(log(.)) pow on EUP.
            lam = jnp.ones_like(one_m_pt)
            for _ in range(int(g)):
                lam = lam * one_m_pt
        else:
            lam = one_m_pt ** g
        f_ref[...] = (lam * loss).astype(f_ref.dtype)


def focal_loss(inputs, targets, label_embs=None, *, gamma=2.0,
               tb_max=1024, tc_max=1024):
    """Pallas TPU implementation of FocalLoss.forward.

    inputs, targets: [B, C] (any float / bool dtype; math is done in f32).
    label_embs: unused by the reference forward pass (kept for parity).
    Returns (F_loss [C], expanded_loss [B, C]) in inputs.dtype.
    """
    del label_embs  # unused by the reference forward pass
    B, C = inputs.shape
    out_dtype = inputs.dtype

    # Sanitize caps to hardware-friendly multiples of (8, 128).
    tb_max = max(8, (int(tb_max) // 8) * 8)
    tc_max = max(128, (int(tc_max) // 128) * 128)

    TB = min(tb_max, _round_up(B, 8))
    TC = min(tc_max, _round_up(C, 128))
    # Guarantee >= 2 tiles on the leading "parallel" C axis whenever possible
    # so both TensorCores of a v7x chip get work (harmless on v5e/v6e).
    if pl.cdiv(C, TC) < 2 and C > 128:
        TC = _round_up(pl.cdiv(C, 2), 128)

    nc = pl.cdiv(C, TC)
    nb = pl.cdiv(B, TB)
    grid = (nc, nb)   # (parallel C axis, arbitrary B reduction axis)

    # Number of valid rows in the last B tile (None => no masking needed).
    valid_rows_last = None if B % TB == 0 else B - (nb - 1) * TB

    kernel = functools.partial(
        _focal_loss_kernel,
        gamma=float(gamma),
        b_total=B,
        tb=TB,
        valid_rows_last=valid_rows_last,
    )

    f_loss, expanded = pl.pallas_call(
        kernel,
        out_shape=(
            jax.ShapeDtypeStruct((1, C), out_dtype),    # F_loss (lane-dense 2-D)
            jax.ShapeDtypeStruct((B, C), out_dtype),    # expanded_loss
        ),
        grid=grid,
        in_specs=[
            pl.BlockSpec((TB, TC), lambda c, b: (b, c)),
            pl.BlockSpec((TB, TC), lambda c, b: (b, c)),
        ],
        out_specs=(
            # Same block across the B axis -> resident accumulator-style output.
            pl.BlockSpec((1, TC), lambda c, b: (0, c)),
            pl.BlockSpec((TB, TC), lambda c, b: (b, c)),
        ),
        scratch_shapes=[pltpu.VMEM((8, TC), jnp.float32)],
        compiler_params=pltpu.CompilerParams(
            dimension_semantics=("parallel", "arbitrary"),
            vmem_limit_bytes=48 * 1024 * 1024,
        ),
    )(inputs, targets)

    return f_loss[0], expanded


def _reference(inputs, targets, gamma):
    x = inputs.astype(jnp.float32)
    t = targets.astype(jnp.float32)
    expanded = jnp.maximum(x, 0.0) - x * t + jnp.log1p(jnp.exp(-jnp.abs(x)))
    _loss = jnp.mean(expanded, axis=0)
    pt = jnp.exp(-_loss)
    lam = (1.0 - pt) ** gamma
    return lam * _loss, expanded.astype(inputs.dtype)


if __name__ == "__main__":
    # Small shapes chosen to exercise a multi-tile grid, the B-axis
    # accumulator, ragged (partial-block) edges, and last-tile row masking.
    B, C, E = 20, 384, 32
    gamma = 2.0

    key = jax.random.PRNGKey(0)
    k1, k2, k3 = jax.random.split(key, 3)
    inputs = jax.random.normal(k1, (B, C), dtype=jnp.float32)            # logits
    targets = (jax.random.uniform(k2, (B, C)) > 0.5).astype(jnp.float32)
    label_embs = jax.random.normal(k3, (C, E), dtype=jnp.float32)        # unused

    f_ref, e_ref = _reference(inputs, targets, gamma)

    # (1) Tiny tiles -> grid (3, 3): exercises B-axis accumulation, ragged
    #     last-B-tile masking, and multiple parallel C tiles.
    f_loss, expanded_loss = focal_loss(inputs, targets, label_embs,
                                       gamma=gamma, tb_max=8, tc_max=128)
    jax.block_until_ready((f_loss, expanded_loss))
    assert f_loss.shape == (C,) and expanded_loss.shape == (B, C)
    assert jnp.allclose(f_loss, f_ref, atol=1e-5, rtol=1e-5)
    assert jnp.allclose(expanded_loss, e_ref, atol=1e-5, rtol=1e-5)

    # (2) Default (production) tile caps: single B tile, 2 parallel C tiles
    #     (forced split so a v7x chip uses both TensorCores).
    f_loss2, expanded_loss2 = focal_loss(inputs, targets, label_embs, gamma=gamma)
    jax.block_until_ready((f_loss2, expanded_loss2))
    assert jnp.allclose(f_loss2, f_ref, atol=1e-5, rtol=1e-5)
    assert jnp.allclose(expanded_loss2, e_ref, atol=1e-5, rtol=1e-5)

    print("KERNEL_OK")
</pallas_src>

<mosaic_0001>
module attributes {stable_mosaic.version = 11 : i64} {
  func.func @_focal_loss_kernel(%arg0: i32, %arg1: i32, %arg2: memref<8x128xf32, #tpu.memory_space<vmem>>, %arg3: memref<8x128xf32, #tpu.memory_space<vmem>>, %arg4: memref<1x128xf32, #tpu.memory_space<vmem>>, %arg5: memref<8x128xf32, #tpu.memory_space<vmem>>, %arg6: memref<8x128xf32, #tpu.memory_space<vmem>>) attributes {dimension_semantics = [#tpu.dimension_semantics<parallel>, #tpu.dimension_semantics<arbitrary>], iteration_bounds = array<i64: 3, 3>, scalar_prefetch = 0 : i64, scratch_operands = 1 : i64, tpu.core_type = #tpu.core_type<tc>, window_params = [{transform_indices = @transform_0, window_bounds = array<i64: 8, 128>}, {transform_indices = @transform_1, window_bounds = array<i64: 8, 128>}, {transform_indices = @transform_2, window_bounds = array<i64: 1, 128>}, {transform_indices = @transform_3, window_bounds = array<i64: 8, 128>}]} {
    %c0_i32 = arith.constant 0 : i32
    %0 = arith.cmpi eq, %arg1, %c0_i32 : i32
    %1 = arith.extui %0 : i1 to i32
    %c0_i32_0 = arith.constant 0 : i32
    %2 = arith.cmpi ne, %1, %c0_i32_0 : i32
    scf.if %2 {
      %cst_12 = arith.constant 0.000000e+00 : f32
      %25 = vector.broadcast %cst_12 : f32 to vector<8x128xf32>
      %c0_13 = arith.constant 0 : index
      %c0_14 = arith.constant 0 : index
      %26 = vector.load %arg6[%c0_13, %c0_14] : memref<8x128xf32, #tpu.memory_space<vmem>>, vector<8x128xf32>
      tpu.vector_store %arg6[%c0_13, %c0_14], %25 {strides = array<i32>} : memref<8x128xf32, #tpu.memory_space<vmem>>, vector<8x128xf32>,
    } else {
    }
    %c0 = arith.constant 0 : index
    %c0_1 = arith.constant 0 : index
    %3 = vector.load %arg2[%c0, %c0_1] : memref<8x128xf32, #tpu.memory_space<vmem>>, vector<8x128xf32>
    %c0_2 = arith.constant 0 : index
    %c0_3 = arith.constant 0 : index
    %4 = vector.load %arg3[%c0_2, %c0_3] : memref<8x128xf32, #tpu.memory_space<vmem>>, vector<8x128xf32>
    %cst = arith.constant 0.000000e+00 : f32
    %5 = vector.broadcast %cst : f32 to vector<8x128xf32>
    %6 = arith.maximumf %3, %5 : vector<8x128xf32>
    %7 = arith.mulf %3, %4 : vector<8x128xf32>
    %8 = arith.subf %6, %7 : vector<8x128xf32>
    %9 = math.absf %3 : vector<8x128xf32>
    %cst_4 = arith.constant 0.000000e+00 : f32
    %10 = vector.broadcast %cst_4 : f32 to vector<8x128xf32>
    %11 = arith.subf %10, %9 : vector<8x128xf32>
    %12 = math.exp %11 : vector<8x128xf32>
    %13 = math.log1p %12 : vector<8x128xf32>
    %14 = arith.addf %8, %13 : vector<8x128xf32>
    %c0_5 = arith.constant 0 : index
    %c0_6 = arith.constant 0 : index
    %15 = vector.load %arg5[%c0_5, %c0_6] : memref<8x128xf32, #tpu.memory_space<vmem>>, vector<8x128xf32>
    tpu.vector_store %arg5[%c0_5, %c0_6], %14 {strides = array<i32>} : memref<8x128xf32, #tpu.memory_space<vmem>>, vector<8x128xf32>,
    %c2_i32 = arith.constant 2 : i32
    %16 = arith.cmpi ne, %arg1, %c2_i32 : i32
    %17 = arith.extui %16 : i1 to i32
    %c0_i32_7 = arith.constant 0 : i32
    %18 = arith.cmpi ne, %17, %c0_i32_7 : i32
    scf.if %18 {
      %c0_12 = arith.constant 0 : index
      %c0_13 = arith.constant 0 : index
      %25 = vector.load %arg6[%c0_12, %c0_13] : memref<8x128xf32, #tpu.memory_space<vmem>>, vector<8x128xf32>
      %26 = vector.shape_cast %14 : vector<8x128xf32> to vector<1x8x128xf32>
      %cst_14 = arith.constant dense<0.000000e+00> : vector<8x128xf32>
      %27 = vector.multi_reduction <add>, %26, %cst_14 [0] : vector<1x8x128xf32> to vector<8x128xf32>
      %28 = arith.addf %25, %27 : vector<8x128xf32>
      %c0_15 = arith.constant 0 : index
      %c0_16 = arith.constant 0 : index
      %29 = vector.load %arg6[%c0_15, %c0_16] : memref<8x128xf32, #tpu.memory_space<vmem>>, vector<8x128xf32>
      tpu.vector_store %arg6[%c0_15, %c0_16], %28 {strides = array<i32>} : memref<8x128xf32, #tpu.memory_space<vmem>>, vector<8x128xf32>,
    } else {
    }
    %c2_i32_8 = arith.constant 2 : i32
    %19 = arith.cmpi eq, %arg1, %c2_i32_8 : i32
    %20 = arith.extui %19 : i1 to i32
    %c0_i32_9 = arith.constant 0 : i32
    %21 = arith.cmpi ne, %20, %c0_i32_9 : i32
    scf.if %21 {
      %25 = tpu.iota {dimensions = array<i32: 0>} : vector<8x128xi32>
      %c4_i32 = arith.constant 4 : i32
      %26 = vector.broadcast %c4_i32 : i32 to vector<8x128xi32>
      %27 = arith.cmpi slt, %25, %26 : vector<8x128xi32>
      %cst_12 = arith.constant 0.000000e+00 : f32
      %28 = vector.broadcast %cst_12 : f32 to vector<8x128xf32>
      %29 = arith.select %27, %14, %28 : vector<8x128xi1>, vector<8x128xf32>
      %c0_13 = arith.constant 0 : index
      %c0_14 = arith.constant 0 : index
      %30 = vector.load %arg6[%c0_13, %c0_14] : memref<8x128xf32, #tpu.memory_space<vmem>>, vector<8x128xf32>
      %31 = vector.shape_cast %29 : vector<8x128xf32> to vector<1x8x128xf32>
      %cst_15 = arith.constant dense<0.000000e+00> : vector<8x128xf32>
      %32 = vector.multi_reduction <add>, %31, %cst_15 [0] : vector<1x8x128xf32> to vector<8x128xf32>
      %33 = arith.addf %30, %32 : vector<8x128xf32>
      %c0_16 = arith.constant 0 : index
      %c0_17 = arith.constant 0 : index
      %34 = vector.load %arg6[%c0_16, %c0_17] : memref<8x128xf32, #tpu.memory_space<vmem>>, vector<8x128xf32>
      tpu.vector_store %arg6[%c0_16, %c0_17], %33 {strides = array<i32>} : memref<8x128xf32, #tpu.memory_space<vmem>>, vector<8x128xf32>,
    } else {
    }
    %c2_i32_10 = arith.constant 2 : i32
    %22 = arith.cmpi eq, %arg1, %c2_i32_10 : i32
    %23 = arith.extui %22 : i1 to i32
    %c0_i32_11 = arith.constant 0 : i32
    %24 = arith.cmpi ne, %23, %c0_i32_11 : i32
    scf.if %24 {
      %c0_12 = arith.constant 0 : index
      %c0_13 = arith.constant 0 : index
      %25 = vector.load %arg6[%c0_12, %c0_13] : memref<8x128xf32, #tpu.memory_space<vmem>>, vector<8x128xf32>
      %cst_14 = arith.constant dense<0.000000e+00> : vector<128xf32>
      %26 = vector.multi_reduction <add>, %25, %cst_14 [0] : vector<8x128xf32> to vector<128xf32>
      %27 = vector.shape_cast %26 : vector<128xf32> to vector<1x128xf32>
      %cst_15 = arith.constant 5.000000e-02 : f32
      %28 = vector.broadcast %cst_15 : f32 to vector<1x128xf32>
      %29 = arith.mulf %27, %28 : vector<1x128xf32>
      %cst_16 = arith.constant 0.000000e+00 : f32
      %30 = vector.broadcast %cst_16 : f32 to vector<1x128xf32>
      %31 = arith.subf %30, %29 : vector<1x128xf32>
      %32 = math.exp %31 : vector<1x128xf32>
      %cst_17 = arith.constant 1.000000e+00 : f32
      %33 = vector.broadcast %cst_17 : f32 to vector<1x128xf32>
      %34 = arith.subf %33, %32 : vector<1x128xf32>
      %cst_18 = arith.constant 1.000000e+00 : f32
      %35 = vector.broadcast %cst_18 : f32 to vector<1x128xf32>
      %36 = arith.mulf %35, %34 : vector<1x128xf32>
      %37 = arith.mulf %36, %34 : vector<1x128xf32>
      %38 = arith.mulf %37, %29 : vector<1x128xf32>
      %c0_19 = arith.constant 0 : index
      %c0_20 = arith.constant 0 : index
      %39 = vector.load %arg4[%c0_19, %c0_20] : memref<1x128xf32, #tpu.memory_space<vmem>>, vector<1x128xf32>
      tpu.vector_store %arg4[%c0_19, %c0_20], %38 {strides = array<i32>} : memref<1x128xf32, #tpu.memory_space<vmem>>, vector<1x128xf32>,
    } else {
    }
    return
  }
  func.func @transform_0(%arg0: i32, %arg1: i32) -> (i32, i32) {
    %c0_i32 = arith.constant 0 : i32
    return %arg1, %arg0 : i32, i32
  }
  func.func @transform_1(%arg0: i32, %arg1: i32) -> (i32, i32) {
    %c0_i32 = arith.constant 0 : i32
    return %arg1, %arg0 : i32, i32
  }
  func.func @transform_2(%arg0: i32, %arg1: i32) -> (i32, i32) {
    %c0_i32 = arith.constant 0 : i32
    %c0_i32_0 = arith.constant 0 : i32
    return %c0_i32, %arg0 : i32, i32
  }
  func.func @transform_3(%arg0: i32, %arg1: i32) -> (i32, i32) {
    %c0_i32 = arith.constant 0 : i32
    return %arg1, %arg0 : i32, i32
  }
}

</mosaic_0001>

<bundles_post_ra>
// kernel: tpu_custom_call.1
= control target key start
LH: loop header
LB: loop body
LE: loop exit
PB: predicated region body
PF: predicated region fallthrough
CT: control target
= control target key end

     0   :  { %9 = vsyncpa [#allocation4], 0  ;;  %s1122_s0 = inlined_call_operand.hbm [shape: f32[20,384], index: 0, kind: input, shape index: {}]   ;;  %s1123_s1 = inlined_call_operand.hbm [shape: f32[20,384], index: 1, kind: input, shape index: {}]   ;;  %s1124_s2 = inlined_call_operand.hbm [shape: f32[1,384], index: 2, kind: output, shape index: {0}]   ;;  %s1125_s3 = inlined_call_operand.hbm [shape: f32[20,384], index: 3, kind: output, shape index: {1}]  }
   0x1   :  { %11 = vsyncpa [#allocation4 + $0x1], 0 }
   0x2   :  { %12 = vsyncpa [#allocation7], 0 }
   0x3   :  { %14 = vsyncpa [#allocation7 + $0x1], 0 }
   0x4   :  { %15 = vsyncpa [#allocation5], 0 }
   0x5   :  { %17 = vsyncpa [#allocation5 + $0x1], 0 }
   0x6   :  { %18 = vsyncpa [#allocation10], 0 }
   0x7   :  { %20 = vsyncpa [#allocation10 + $0x1], 0  ;;  %s874_s12 = smov 0   ;;  %s876_s13 = smov 0  }
   0x8   :  { %s878_s14 = smov 0   ;;  %s880_s15 = smov 0  }
   0x9   :  { %s882_s16 = smov 0   ;;  %s884_s17 = smov 0  }
   0xa   :  { %s886_s18 = smov 0   ;;  %s888_s19 = smov 0  }
   0xb   :  { %s890_s20 = smov 0   ;;  %s892_s21 = smov 0  }
   0xc   :  { %s894_s22 = smov 0  }
   0xd LB: > { %1133 = sst [smem:[#allocation15_spill]] %s819_s14  ;;  %s492_s23 = sadd.s32 4294967295, %s851_s22   ;;  %s851_s22 = sphi %s894_s22, %s26_s22   ;;  %s847_s21 = sphi %s892_s21, %s1157_s21   ;;  %s843_s20 = sphi %s890_s20, %s1156_s20   ;;  %s839_s19 = sphi %s888_s19, %s1155_s19   ;;  %s835_s18 = sphi %s886_s18, %s1154_s18   ;;  %s831_s17 = sphi %s884_s17, %s1153_s17   ;;  %s827_s16 = sphi %s882_s16, %s1161_s16   ;;  %s823_s15 = sphi %s880_s15, %s1160_s15   ;;  %s819_s14 = sphi %s878_s14, %s1151_s14   ;;  %s815_s13 = sphi %s876_s13, %s1159_s13   ;;  %s811_s12 = sphi %s874_s12, %s1158_s12  }
   0xe   : > { %1134 = sst [smem:[#allocation16_spill]] %s831_s17  ;;  %s493_s24 = sadd.s32 4294967294, %s851_s22  }
   0xf   : > { %1135 = sst [smem:[#allocation17_spill]] %s843_s20  ;;  %s35_s25 = sadd.s32 1, %s843_s20 }
  0x10   : > { %1136 = sst [smem:[#allocation18_spill]] %s847_s21  ;;  %s38_s26 = sadd.s32 1, %s847_s21 }
  0x11   : > { %p36_p0 = scmp.ge.s32.totalorder %s35_s25, 3  ;;  %s47_s27 = sadd.s32 1, %s831_s17 }
  0x12   : > { %p54_p1 = scmp.ne.s32.totalorder %s831_s17, %s827_s16  ;;  %p55_p2 = scmp.eq.s32.totalorder %s851_s22, 0 }
  0x13   : > { %s1163_s25 = smov (%p36_p0, %s35_s25), 0  ;;  %s1165_s26 = smov (!%p36_p0, %s38_s26), %s847_s21 }
  0x14   : > { %1137 = sst [smem:[#allocation19_spill]] %s1163_s25  ;;  %s42_s28 = ssub.s32 %s843_s20, %s1163_s25 }
  0x15   : > { %p945_p3 = por %p55_p2, %p54_p1  ;;  %p40_p4 = scmp.ge.s32.totalorder %s1165_s26, 3 }
  0x16   : > { %p60_p5 = scmp.ne.s32.totalorder %s827_s16, %s823_s15  ;;  %p61_p6 = scmp.eq.s32.totalorder %s492_s23, 0 }
  0x17   : > { %s101_s30 = sadd.s32 1, %s819_s14  ;;  %s1167_s26 = smov (%p40_p4, %s1165_s26), 0 }
  0x18   : > { %1139 = sst [smem:[#allocation20_spill]] %s1167_s26  ;;  %p957_p7 = por %p61_p6, %p60_p5 }
  0x19   : > { %p111_p8 = scmp.ne.s32.totalorder %s819_s14, %s815_s13  ;;  %s43_s5 = ssub.s32 %s847_s21, %s1167_s26 }
  0x1a   : > { %p112_p9 = scmp.eq.s32.totalorder %s492_s23, 8  ;;  %s44_s6 = sor.u32 %s43_s5, %s42_s28 }
  0x1b   : > { %p99_p10 = scmp.eq.s32.totalorder %s43_s5, 0  ;;  %p45_p11 = scmp.eq.s32.totalorder %s44_s6, 0 }
  0x1c   : > { %p965_p12 = por %p112_p9, %p111_p8  ;;  %p117_p13 = scmp.ne.s32.totalorder %s815_s13, %s811_s12 }
  0x1d   : > { %s970_s8 = scalar_select %p99_p10, %s819_s14, %s101_s30  }
  0x1e   : > { %s973_s9 = scalar_select %p45_p11, %s831_s17, %s47_s27  }
  0x1f   : > { %1142 = sst [smem:[#allocation21_spill]] %s970_s8  ;;  %p118_p0 = scmp.eq.s32.totalorder %s493_s24, 8 }
  0x20   : > { %1143 = sst [smem:[#allocation22_spill]] %s973_s9  ;;  %p980_p2 = por %p112_p9, %p54_p1 }
  0x21   : > { %p984_p4 = por %p118_p0, %p117_p13  ;;  %p991_p6 = por %p118_p0, %p60_p5 }
  0x22   : > { %p536_p8 = scmp.lt.s32.totalorder %s851_s22, 9  ;;  %s166_s27 = sand.u32 1, %s831_s17  }
  0x23   : > { %s1146_s23 = scalar_select %p991_p6, 1, 0 }
  0x24   : > { %s496_s28 = sshll.u32 %s166_s27, 3  ;;  %s511_s30 = smul.u32 3, %s843_s20 }
  0x25   : > { %1147 = sst [smem:[#allocation23_spill]] %s1146_s23  ;;  %s170_s24 = scalar_lea.vmem [#allocation3], %s496_s28 }
  0x26   : > { %s180_s5 = sshll.u32 %s170_s24, 4  ;;  %p1000_p1 = pnand %p536_p8, %p945_p3  ;;  %s181_s5 = int_to_ptr.vmem [resolvable:$true] %s180_s5 }
  0x27   : > { %s174_s26 = sadd.s32 %s847_s21, %s511_s30  ;;  %p500_p5 = scmp.ge.s32.totalorder %s851_s22, 1 }
  0x28   : > { %s497_s25 = sshll.u32 %s174_s26, 3  ;;  %p206_p9 = scmp.lt.s32.totalorder %s851_s22, 10 }
  0x29   : > { %s176_s14 = scalar_lea.hbm %s1122_s0, %s497_s25  ;;  %s167_s20 = scalar_lea.sflag [#allocation4], %s166_s27 }
  0x2a   : > { %s178_s17 = sshll.u32 %s176_s14, 4  ;;  %p207_p3 = pnand %p500_p5, %p206_p9  ;;  %s179_s17 = int_to_ptr.hbm [resolvable:$true] %s178_s17 }
  0x2b   : > { %525 = dma.hbm_to_vmem [thread:$0]  (!%p1000_p1), %s179_s17, 128, %s181_s5, %s167_s20  }
  0x2c   : > { %s197_s23 = scalar_lea.hbm %s1123_s1, %s497_s25  ;;  %s191_s30 = scalar_lea.vmem [#allocation6], %s496_s28 }
  0x2d   : > { %s201_s21 = sshll.u32 %s191_s30, 4  ;;  %s199_s26 = sshll.u32 %s197_s23, 4  ;;  %s202_s21 = int_to_ptr.vmem [resolvable:$true] %s201_s21  ;;  %s200_s26 = int_to_ptr.hbm [resolvable:$true] %s199_s26 }
  0x2e   : > { %s188_s8 = scalar_lea.sflag [#allocation7], %s166_s27  ;;  %210 = sbr.rel (%p207_p3) target bundleno = 176 (0xb0), region = 28 }
  0x2f   : > { %528 = dma.hbm_to_vmem [thread:$0]  (!%p1000_p1), %s200_s26, 128, %s202_s21, %s188_s8  }
  0x30   : > { %s1018_s14 = sand.u32 (!%p207_p3), 1, %s827_s16  }
  0x31   : > { %s1021_s17 = sshll.u32 (!%p207_p3), %s1018_s14, 3  ;;  %s213_s20 = scalar_lea.sflag (!%p207_p3), [#allocation4], %s1018_s14 }
  0x32   : > { %s216_s25 = scalar_lea.vmem (!%p207_p3), [#allocation3], %s1021_s17 }
  0x33   : > { %794 = dma.done.wait (%p957_p7), %s213_s20, 128  }
  0x34   : > { %796 = vsyncadd (%p957_p7), %s213_s20, 4294967168  ;;  %s223_s21 = scalar_lea.sflag [#allocation7], %s1018_s14  ;;  %s226_s9 = scalar_lea.vmem [#allocation6], %s1021_s17 }
  0x35   : > { %798 = dma.done.wait (%p957_p7), %s223_s21, 128  }
  0x36   : > { %800 = vsyncadd (%p957_p7), %s223_s21, 4294967168  ;;  %s250_s23 = sand.u32 1, %s815_s13   ;;  %s258_s28 = scalar_lea.vmem [#allocation9], %s1021_s17 }
  0x37   : > { %s1038_s27 = scalar_lea.vmem [#allocation8], %s250_s23  ;;  %p504_p10 = scmp.ne.s32.totalorder %s835_s18, 0 }
  0x39   : > { %262 = sbr.rel (%p504_p10) target bundleno = 64 (0x40), region = 40 }
  0x3e   : > { %v853_v0 = vmov 0.0  }
  0x3f   : > { %263 = vst [vmem:[#allocation2] sm:$0xff] %v853_v0 }
  0x40 PF: > { %v264_v1 = vld [vmem:[%s216_s25] sm:$0xff]  ;;  %v265_v8 = vld [vmem:[%s226_s9] sm:$0xff]  ;;  %p505_p7 = scmp.eq.s32.totalorder %s835_s18, 2 }
  0x41   : > { %v269_v2 = vand.u32 2147483647, %v264_v1  ;;  %v266_v10 = vmax.f32 %v264_v1, 0.0  ;;  %v267_v11 = vmul.f32 %v265_v8, %v264_v1 }
  0x43   : > { %v270_v3 = vsub.f32 0.0, %v269_v2  ;;  %v268_v15 = vsub.f32 %v266_v10, %v267_v11 }
  0x45   : > { %v271_v4 = vmul.f32 1.442695, %v270_v3 }
  0x47   : > { %627 = vpow2.f32 %v271_v4 }
  0x4d   : > { %v628_v5 = vpop.eup %627 }
  0x4e   : > { %v273_v6 = vadd.f32 1.0, %v628_v5  ;;  %v276_v7 = vmul.f32 -0.5, %v628_v5  ;;  %v279_v12 = vand.u32 2147483647, %v628_v5 }
  0x50   : > { %629 = vlog2.f32 %v273_v6  ;;  %v277_v9 = vadd.f32 1.0, %v276_v7  ;;  %vm280_vm0 = vcmp.lt.f32.partialorder %v279_v12, 0.0004427343 }
  0x52   : > { %v278_v13 = vmul.f32 %v628_v5, %v277_v9 }
  0x56   : > { %v630_v14 = vpop.eup %629 }
  0x57   : > { %v275_v16 = vmul.f32 0.6931472, %v630_v14 }
  0x58   : > { %287 = sbr.rel (%p505_p7) target bundleno = 97 (0x61), region = 44 }
  0x59   : > { %v281_v17 = vsel %vm280_vm0, %v278_v13, %v275_v16 }
  0x5a   : > { %v282_v18 = vadd.f32 %v281_v17, %v268_v15 }
  0x5c   : > { %283 = vst [vmem:[%s258_s28] sm:$0xff] %v282_v18 }
  0x5d   : > { %v288_v19 = vld [vmem:[#allocation2] sm:$0xff] }
  0x5e   : > { %v290_v20 = vadd.f32 %v288_v19, %v282_v18 }
  0x60   : > { %291 = vst [vmem:[#allocation2] sm:$0xff] %v290_v20 }
  0x61 PF: > { %p506_p11 = scmp.ne.s32.totalorder %s835_s18, 2 }
  0x63   : > { %295 = sbr.rel (%p506_p11) target bundleno = 144 (0x90), region = 48 }
  0x68   : > { %v296_v21 = vlaneseq  ;;  %v300_v23 = vld [vmem:[#allocation2] sm:$0xff] }
  0x6a   : > { %v297_v22 = vshrl.u32 %v296_v21, 7 }
  0x6c   : > { %vm298_vm1 = vcmp.lt.s32.totalorder %v297_v22, 4 }
  0x6d   : > { %v299_v24 = vsel %vm298_vm1, %v282_v18, 0.0 }
  0x6e   : > { %v302_v25 = vadd.f32 %v300_v23, %v299_v24 }
  0x70   : > { %303 = vst [vmem:[#allocation2] sm:$0xff] %v302_v25  ;;  %v305_v26 = vrot.slane %v302_v25, 4 }
  0x72   : > { %v306_v27 = vadd.f32 %v305_v26, %v302_v25 }
  0x74   : > { %v307_v28 = vrot.slane %v306_v27, 2 }
  0x76   : > { %v308_v29 = vadd.f32 %v307_v28, %v306_v27 }
  0x78   : > { %v309_v30 = vrot.slane %v308_v29, 1 }
  0x7a   : > { %v310_v31 = vadd.f32 %v309_v30, %v308_v29 }
  0x7c   : > { %v311_v32 = vmul.f32 0.05, %v310_v31 }
  0x7e   : > { %v312_v33 = vsub.f32 0.0, %v311_v32 }
  0x80   : > { %v313_v34 = vmul.f32 1.442695, %v312_v33 }
  0x82   : > { %631 = vpow2.f32 %v313_v34 }
  0x88   : > { %v632_v35 = vpop.eup %631 }
  0x89   : > { %v315_v36 = vsub.f32 1.0, %v632_v35 }
  0x8b   : > { %v316_v37 = vmul.f32 %v315_v36, %v315_v36 }
  0x8d   : > { %v317_v38 = vmul.f32 %v316_v37, %v311_v32 }
  0x8f   : > { %318 = vst [vmem:[%s1038_s27] sm:$0x1] %v317_v38 }
  0x90 PF: > { %s333_s6 = scalar_lea.hbm %s1124_s2, %s839_s19  ;;  %s335_s29 = sshll.u32 %s1038_s27, 4  ;;  %s336_s29 = int_to_ptr.vmem [resolvable:$true] %s335_s29 }
  0x91   : > { %s337_s24 = sshll.u32 %s333_s6, 4  ;;  %s320_s30 = scalar_lea.sflag [#allocation5], %s250_s23  ;;  %s338_s24 = int_to_ptr.hbm [resolvable:$true] %s337_s24 }
  0x92   : > { %s707_s26 = sshra.s32 %s338_s24, 4  ;;  %s713_s21 = scalar_lea.hbm %s1124_s2, 3  ;;  %s708_s26 = int_to_ptr.hbm [resolvable:$true] %s707_s26 }
  0x93   : > { %s709_s8 = scalar_lea.hbm %s708_s26, 1  ;;  %p714_p1 = scmp.lt.s32.totalorder %s708_s26, %s1124_s2 }
  0x94   : > { %p710_p13 = scmp.ne.s32.totalorder %s708_s26, %s709_s8  ;;  %p715_p5 = scmp.lt.s32.totalorder %s713_s21, %s709_s8 }
  0x96   : > { %p711_p0 = pnand %p710_p13, %p965_p12  ;;  %p716_p9 = por %p715_p5, %p714_p1 }
  0x98   : > { %p712_p8 = pneg %p711_p0 }
  0x9a   : > { %p717_p3 = pnand %p716_p9, %p712_p8 }
  0x9c   : > { %720 = shalt.err (!%p717_p3)
}
  0x9d   : > { %518 = dma.vmem_to_hbm [thread:$0]  (%p965_p12), %s336_s29, 16, %s338_s24, %s320_s30  }
  0x9e   : > { %s513_s23 = smul.u32 3, %s835_s18  ;;  %s351_s27 = sshll.u32 %s258_s28, 4  ;;  %s352_s27 = int_to_ptr.vmem [resolvable:$true] %s351_s27 }
  0x9f   : > { %s324_s21 = scalar_lea.sflag [#allocation10], %s1018_s14 }
  0xa0   : > { %s347_s5 = sadd.s32 %s839_s19, %s513_s23  ;;  %s741_s19 = scalar_lea.hbm %s1125_s3, 72 }
  0xa1   : > { %s508_s6 = sshll.u32 %s347_s5, 3 }
  0xa2   : > { %s349_s26 = scalar_lea.hbm %s1125_s3, %s508_s6 }
  0xa3   : > { %s353_s8 = sshll.u32 %s349_s26, 4  ;;  %s354_s8 = int_to_ptr.hbm [resolvable:$true] %s353_s8 }
  0xa4   : > { %s735_s7 = sshra.s32 %s354_s8, 4  ;;  %s736_s7 = int_to_ptr.hbm [resolvable:$true] %s735_s7 }
  0xa5   : > { %s737_s9 = scalar_lea.hbm %s736_s7, 8  ;;  %p742_p11 = scmp.lt.s32.totalorder %s736_s7, %s1125_s3 }
  0xa6   : > { %p738_p10 = scmp.ne.s32.totalorder %s736_s7, %s737_s9  ;;  %p743_p13 = scmp.lt.s32.totalorder %s741_s19, %s737_s9 }
  0xa8   : > { %p739_p7 = pnand %p738_p10, %p980_p2  ;;  %p744_p0 = por %p743_p13, %p742_p11 }
  0xaa   : > { %p740_p12 = pneg %p739_p7 }
  0xac   : > { %p745_p8 = pnand %p744_p0, %p740_p12 }
  0xae   : > { %748 = shalt.err (!%p745_p8)
}
  0xaf   : > { %519 = dma.vmem_to_hbm [thread:$0]  (%p980_p2), %s352_s27, 128, %s354_s8, %s324_s21  }
  0xb0 PF: > { %p537_p1 = scmp.ge.s32.totalorder %s851_s22, 2  ;;  %s365_s14 = sand.u32 1, %s811_s12  }
  0xb1   : > { %s366_s24 = scalar_lea.sflag [#allocation5], %s365_s14 }
  0xb2   : > { %p530_p5 = pnand %p537_p1, %p984_p4 }
  0xb4   : > { %p531_p9 = pneg %p530_p5 }
  0xb6   : > { %802 = dma.done.wait (%p531_p9), %s366_s24, 16  }
  0xb7   : > { %804 = vsyncadd (%p531_p9), %s366_s24, 4294967280  ;;  %s374_s4 = sand.u32 1, %s823_s15   ;;  %p533_p3 = pnand %p537_p1, %p991_p6 }
  0xb8   : > { %s375_s10 = scalar_lea.sflag [#allocation10], %s374_s4 }
  0xb9   : > { %p534_p10 = pneg %p533_p3 }
  0xbb   : > { %806 = dma.done.wait (%p534_p10), %s375_s10, 128  }
  0xbc   : > { %808 = vsyncadd (%p534_p10), %s375_s10, 4294967168  ;;  %s26_s22 = sadd.s32 1, %s851_s22   ;;  %s1150_s23 = sld [smem:[#allocation15_spill]] }
  0xbd   : > { %p23_p2 = scmp.ge.s32.totalorder %s26_s22, 11   ;;  %s1151_s14 = sld [smem:[#allocation21_spill]] }
  0xbe   : > { %s1152_s11 = sld [smem:[#allocation16_spill]]  ;;  %s1158_s12 = smov %s815_s13 }
  0xbf   : > { %s1153_s17 = sld [smem:[#allocation22_spill]]  ;;  %s1160_s15 = smov %s827_s16 }
  0xc0   : > { %s1154_s18 = sld [smem:[#allocation17_spill]]  ;;  %25 = sbr.rel (!%p23_p2) target bundleno = 13 (0xd), region = 115 }
  0xc1   : > { %s1155_s19 = sld [smem:[#allocation18_spill]] }
  0xc2   : > { %s1156_s20 = sld [smem:[#allocation19_spill]]  ;;  %s1159_s13 = smov %s1150_s23 }
  0xc3   : > { %s1157_s21 = sld [smem:[#allocation20_spill]] }
  0xc4   : > { %s1161_s16 = smov %s1152_s11 }
  0xc5   :  { %381 = vsyncpa [#allocation4], 1 }
  0xc6   :  { %383 = vsyncpa [#allocation4 + $0x1], 1 }
  0xc7   :  { %384 = vsyncpa [#allocation7], 1 }
  0xc8   :  { %386 = vsyncpa [#allocation7 + $0x1], 1 }
  0xc9   :  { %387 = vsyncpa [#allocation5], 1 }
  0xca   :  { %389 = vsyncpa [#allocation5 + $0x1], 1 }
  0xcb   :  { %390 = vsyncpa [#allocation10], 1 }
  0xcc   :  { %392 = vsyncpa [#allocation10 + $0x1], 1 }

</bundles_post_ra>
